<compile_context>
chip_gen: v6e
topology: v6e:2x2x1
jax: 0.10.0
libtpu: 0.0.40
codegen_flags: <defaults>
</compile_context>

<pallas_src>
import numpy as np
import jax
import jax.numpy as jnp
from jax.experimental import pallas as pl
from jax.experimental.pallas import tpu as pltpu

NUM_RBF = 16
RBF_VMIN, RBF_VMAX = 2.0, 22.0
RBF_STD = (RBF_VMAX - RBF_VMIN) / NUM_RBF
NEG_BIG = -1e30  # finite "minus infinity" for padded logit columns


def _round_up(x, m):
    return ((x + m - 1) // m) * m


def _divisors(n):
    return [d for d in range(1, n + 1) if n % d == 0]


def _choose_pair_tiles(B, L, D, out_itemsize, target_bytes=10 << 20):
    """Divisor-only tile search for the (B, L, L*D) broadcast output.

    Row tile must be a multiple of 8 (or the full dim L); lane tile t_lj*D must be a multiple of
    128 (or the full dim L*D).  Output block is capped at `target_bytes` so the double-buffered
    working set stays well inside every generation's scoped VMEM (incl. v5e's small default and
    v7x's 64 MiB physical), while being large enough to amortize the ~0.35 us per-step overhead.
    """
    divs = _divisors(L)
    li_cands = sorted(set(d for d in divs if d % 8 == 0) | {L})
    lj_cands = sorted(set(d for d in divs if (d * D) % 128 == 0) | {L})
    blk = lambda i, j: i * j * D * out_itemsize
    lj_min = lj_cands[0]

    fit_i = [d for d in li_cands if d <= 256 and blk(d, lj_min) <= target_bytes]
    t_li = max(fit_i) if fit_i else li_cands[0]
    if B == 1:  # keep >=2 row-blocks so the megacore split survives on the (B, i) axes
        ok = [d for d in li_cands if L // d >= 2 and blk(d, lj_min) <= target_bytes]
        if L // t_li < 2 and ok:
            t_li = max(ok)

    fit_j = [d for d in lj_cands if blk(t_li, d) <= target_bytes]
    t_lj = max(fit_j) if fit_j else lj_min
    return t_li, t_lj


# --------------------------------------------------------------------------------------
# Kernel 1: dis_embed[b, i, j*D+d] = mask[b,i] * (mask[b,j]*e[d])  (lane-dense, HBM-write bound)
# --------------------------------------------------------------------------------------
def _make_mask_broadcast_kernel(t_li):
    def kernel(mrow_ref, colfac_ref, out_ref):
        # mrow_ref  : [1, L, 1]       resident per batch (constant index_map across i, j)
        # colfac_ref: [1, 1, t_lj*D]  lane-dense column factor block
        # out_ref   : [1, t_li, t_lj*D]  (bf16 by default)
        ri = pl.program_id(1) * t_li
        if t_li % 8 == 0:
            ri = pl.multiple_of(ri, 8)
        row = mrow_ref[0, pl.ds(ri, t_li), :]                 # [t_li, 1] sublane slice, no DMA
        out_ref[0] = (row * colfac_ref[0]).astype(out_ref.dtype)
    return kernel


# --------------------------------------------------------------------------------------
# Kernel 2: seq head = LayerNorm(C_s) -> Linear(C_s, 20 padded to 128) -> log_softmax(-1)
# --------------------------------------------------------------------------------------
def _seq_head_kernel(s_ref, g_ref, b_ref, w_ref, bias_ref, out_ref):
    """s_ref: [TR, C]; g/b: [1, C]; w: [C, KP]; bias: [1, KP] (-1e30 in pad cols); out: [TR, KP]."""
    x = s_ref[...].astype(jnp.float32)
    mu = jnp.mean(x, axis=-1, keepdims=True)
    xc = x - mu
    var = jnp.mean(xc * xc, axis=-1, keepdims=True)
    xn = xc * jax.lax.rsqrt(var + 1e-5) * g_ref[...] + b_ref[...]
    logits = jnp.dot(xn, w_ref[...], preferred_element_type=jnp.float32) + bias_ref[...]
    mx = jnp.max(logits, axis=-1, keepdims=True)              # pad cols are -1e30 -> ignored
    sh = logits - mx
    out_ref[...] = sh - jnp.log(jnp.sum(jnp.exp(sh), axis=-1, keepdims=True))


# --------------------------------------------------------------------------------------
# Wrappers
# --------------------------------------------------------------------------------------
def protein_features_pallas(coord, mask, edge_w, *, out_dtype=jnp.bfloat16,
                            materialize=True, block_target_bytes=10 << 20):
    """ProteinFeatures.forward.  coord [B,L,4,3], mask [B,L], edge_w [D, 25*NUM_RBF].

    Returns (dis_embed or None, row_factor [B,L] f32, col_factor [B,L,D] f32) where
    dis_embed[b,i,j,:] == row_factor[b,i] * col_factor[b,j,:].  Prefer materialize=False and fuse
    the rank-1 broadcast into the consumer; the materialized B*L*L*D write dominates this forward.
    """
    B, L = coord.shape[:2]
    D = edge_w.shape[0]
    coord = coord.astype(jnp.float32)
    N = coord[:, :, 0, :]
    Ca = coord[:, :, 1, :]
    C = coord[:, :, 2, :]
    O = coord[:, :, 3, :]
    bvec = Ca - N
    cvec = C - Ca
    avec = jnp.cross(bvec, cvec)
    Cb = -0.58273431 * avec + 0.56802827 * bvec - 0.54067466 * cvec + Ca
    atoms = jnp.stack([N, Ca, C, Cb, O], axis=0)              # [5, B, L, 3]

    # Single scalar "distance" per atom pair (torch.sum with no dim), closed form per batch.
    # Centre per batch first (invariant of the pairwise differences) to avoid f32 cancellation.
    centroid = jnp.mean(atoms, axis=(0, 2), keepdims=True)    # [1, B, 1, 3]
    ac = atoms - centroid
    sv = jnp.sum(ac, axis=2)                                  # [5, B, 3]
    ssq_tot = jnp.sum(ac * ac, axis=(1, 2, 3))                # [5]
    gram = jnp.einsum('abx,cbx->ac', sv, sv)                  # [5, 5]
    d2 = float(L) * (ssq_tot[:, None] + ssq_tot[None, :]) - 2.0 * gram
    d2 = jnp.maximum(d2, 0.0)

    # RBF(16) of the 25 scalars + edge_embedding matvec: tiny, plain jnp (no kernel launch).
    d = jnp.sqrt(d2 + 1e-6)                                   # matches sqrt(sum(...) + 1e-6)
    centers = jnp.linspace(RBF_VMIN, RBF_VMAX, NUM_RBF, dtype=jnp.float32)
    z = (d[:, :, None] - centers[None, None, :]) * (1.0 / RBF_STD)
    rbf = jnp.exp(-(z * z)).reshape(25 * NUM_RBF)             # [400], pair-major like torch.cat
    e = jnp.dot(rbf, edge_w.T.astype(jnp.float32),
                precision=jax.lax.Precision.HIGHEST)          # [D]

    mask_f = mask.astype(jnp.float32)
    col_factor = mask_f[:, :, None] * e[None, None, :]        # [B, L, D]
    if not materialize:
        return None, mask_f, col_factor

    t_li, t_lj = _choose_pair_tiles(B, L, D, np.dtype(out_dtype).itemsize, block_target_bytes)
    tjd = t_lj * D
    mask_row = mask_f.reshape(B, L, 1)
    colfac = col_factor.reshape(B, 1, L * D)

    out2d = pl.pallas_call(
        _make_mask_broadcast_kernel(t_li),
        grid=(B, L // t_li, L // t_lj),
        in_specs=[
            pl.BlockSpec((1, L, 1), lambda b, i, j: (b, 0, 0)),     # resident mask column per b
            pl.BlockSpec((1, 1, tjd), lambda b, i, j: (b, 0, j)),   # lane-dense column factor
        ],
        out_specs=pl.BlockSpec((1, t_li, tjd), lambda b, i, j: (b, i, j)),
        out_shape=jax.ShapeDtypeStruct((B, L, L * D), out_dtype),
        compiler_params=pltpu.CompilerParams(
            dimension_semantics=("parallel", "parallel", "parallel"),
            vmem_limit_bytes=48 * 1024 * 1024),
    )(mask_row, colfac)
    return out2d.reshape(B, L, L, D), mask_f, col_factor


def seq_head_pallas(s_s, ln_g, ln_b, proj_w, proj_b, *, tile_r=512):
    """norm1 -> seq_project -> log_softmax.  s_s [B,L,C], proj_w [K,C], proj_b [K]."""
    B, L, Cs = s_s.shape
    K = proj_w.shape[0]
    R = B * L
    TR = min(tile_r, _round_up(R, 8))                         # row tile, multiple of 8
    Rp = _round_up(R, TR)
    KP = max(128, _round_up(K, 128))                          # lane-dense output width

    x = s_s.reshape(R, Cs).astype(jnp.float32)
    if Rp != R:
        x = jnp.pad(x, ((0, Rp - R), (0, 0)))
    w_pad = jnp.zeros((Cs, KP), jnp.float32).at[:, :K].set(proj_w.T.astype(jnp.float32))
    b_pad = jnp.full((1, KP), NEG_BIG, jnp.float32).at[0, :K].set(proj_b.astype(jnp.float32))

    out = pl.pallas_call(
        _seq_head_kernel,
        grid=(Rp // TR,),
        in_specs=[
            pl.BlockSpec((TR, Cs), lambda i: (i, 0)),
            pl.BlockSpec((1, Cs), lambda i: (0, 0)),
            pl.BlockSpec((1, Cs), lambda i: (0, 0)),
            pl.BlockSpec((Cs, KP), lambda i: (0, 0)),
            pl.BlockSpec((1, KP), lambda i: (0, 0)),
        ],
        out_specs=pl.BlockSpec((TR, KP), lambda i: (i, 0)),
        out_shape=jax.ShapeDtypeStruct((Rp, KP), jnp.float32),
        compiler_params=pltpu.CompilerParams(dimension_semantics=("parallel",)),
    )(x, ln_g.reshape(1, Cs).astype(jnp.float32), ln_b.reshape(1, Cs).astype(jnp.float32),
      w_pad, b_pad)
    return out[:R, :K].reshape(B, L, K)


def esm_inpaint_forward(coord, S, s_s_trunk, params, mask=None, bert_mask_structure=None,
                        sample_key=None, dis_embed_dtype=jnp.bfloat16):
    """Pallas version of esm_inpaint.forward (the implementable portion)."""
    if mask is None:
        mask = jnp.ones(S.shape, coord.dtype)
    feat_mask = mask if bert_mask_structure is None else mask * bert_mask_structure

    dis_embed, dis_row_factor, dis_col_factor = protein_features_pallas(
        coord, feat_mask, params['edge_w'], out_dtype=dis_embed_dtype, materialize=True)

    # TODO(synk): utils.get_bb_frames / Rigid.from_tensor_4x4 target-frame construction has no source here.
    # TODO(synk): self.esmfold (full pretrained ESMFold trunk) cannot be synthesized as a kernel;
    #             `s_s_trunk` stands in for structure['s_s']; frames/positions/ptm/plddt are omitted.
    #             In production, feed dis_row_factor/dis_col_factor into the trunk's pair-embedding
    #             kernel and fuse the rank-1 broadcast there instead of materializing dis_embed.

    log_softmax_aa = seq_head_pallas(
        s_s_trunk, params['ln1_g'], params['ln1_b'], params['proj_w'], params['proj_b'])

    # torch.multinomial(softmax(seq[0]), 1) <-> categorical sampling on the same logits (glue).
    if sample_key is None:
        sample_key = jax.random.PRNGKey(0)
    sample_seq = jax.random.categorical(sample_key, log_softmax_aa[0], axis=-1)

    return {
        'log_softmax_aa': log_softmax_aa,
        'aatype': sample_seq[None, :],
        'dis_embed': dis_embed,
        'dis_row_factor': dis_row_factor,
        'dis_col_factor': dis_col_factor,
        's_s': s_s_trunk,
    }


# --------------------------------------------------------------------------------------
# Pure-JAX reference (mirrors the PyTorch code, direct pairwise sums) for correctness
# --------------------------------------------------------------------------------------
def _reference(coord, mask, s_s, params):
    N = coord[:, :, 0, :]
    Ca = coord[:, :, 1, :]
    C = coord[:, :, 2, :]
    O = coord[:, :, 3, :]
    b = Ca - N
    c = C - Ca
    a = jnp.cross(b, c)
    Cb = -0.58273431 * a + 0.56802827 * b - 0.54067466 * c + Ca
    atoms = [N, Ca, C, Cb, O]
    centers = jnp.linspace(RBF_VMIN, RBF_VMAX, NUM_RBF, dtype=jnp.float32)
    rbf_all = []
    for a1 in atoms:
        for a2 in atoms:
            d = jnp.sqrt(jnp.sum(jnp.square(a1[:, :, None, :] - a2[:, None, :, :])) + 1e-6)
            z = (d - centers) / RBF_STD
            rbf_all.append(jnp.exp(-z * z))
    rbf_all = jnp.concatenate(rbf_all, axis=-1)                     # [400]
    E = jnp.dot(rbf_all, params['edge_w'].T, precision=jax.lax.Precision.HIGHEST)   # [D]
    mask2d = mask[:, :, None] * mask[:, None, :]
    dis_embed = E[None, None, None, :] * mask2d[..., None]

    x = s_s
    mu = x.mean(-1, keepdims=True)
    var = ((x - mu) ** 2).mean(-1, keepdims=True)
    xn = (x - mu) / jnp.sqrt(var + 1e-5) * params['ln1_g'] + params['ln1_b']
    logits = jnp.dot(xn, params['proj_w'].T, precision=jax.lax.Precision.HIGHEST) + params['proj_b']
    logp = jax.nn.log_softmax(logits, axis=-1)
    return dis_embed, logp


if __name__ == "__main__":
    B, L = 2, 16
    D_PAIR = 128      # cfg.trunk.pairwise_state_dim
    C_S = 64          # cfg.trunk.sequence_state_dim (real ESMFold uses 1024)
    N_AA = 20

    key = jax.random.PRNGKey(0)
    k_coord, k_s, k_ss, k_ew, k_pw, k_pb, k_sample = jax.random.split(key, 7)

    coord = 0.3 * jax.random.normal(k_coord, (B, L, 4, 3), jnp.float32)
    S = jax.random.randint(k_s, (B, L), 0, N_AA, jnp.int32)
    mask = jnp.ones((B, L), jnp.float32)
    s_s = jax.random.normal(k_ss, (B, L, C_S), jnp.float32)   # stand-in for structure['s_s']

    lim_e = 1.0 / np.sqrt(NUM_RBF * 25)
    lim_p = 1.0 / np.sqrt(C_S)
    params = {
        'edge_w': jax.random.uniform(k_ew, (D_PAIR, NUM_RBF * 25), jnp.float32, -lim_e, lim_e),
        'ln1_g': jnp.ones((C_S,), jnp.float32),
        'ln1_b': jnp.zeros((C_S,), jnp.float32),
        'proj_w': jax.random.uniform(k_pw, (N_AA, C_S), jnp.float32, -lim_p, lim_p),
        'proj_b': jax.random.uniform(k_pb, (N_AA,), jnp.float32, -lim_p, lim_p),
    }

    out = esm_inpaint_forward(coord, S, s_s, params, mask=mask, sample_key=k_sample)
    out = jax.block_until_ready(out)

    ref_dis, ref_logp = _reference(coord, mask, s_s, params)

    # Materialized pair embedding is bf16 (perf) -> compare with bf16-level tolerance.
    dis_f32 = np.asarray(out['dis_embed'].astype(jnp.float32))
    np.testing.assert_allclose(dis_f32, np.asarray(ref_dis), rtol=1e-2, atol=1e-3)

    # The rank-1 factors (what a fused consumer would use) reconstruct the f32 result tightly.
    recon = (np.asarray(out['dis_row_factor'])[:, :, None, None]
             * np.asarray(out['dis_col_factor'])[:, None, :, :])
    np.testing.assert_allclose(recon, np.asarray(ref_dis), rtol=5e-3, atol=1e-3)

    np.testing.assert_allclose(np.asarray(out['log_softmax_aa']), np.asarray(ref_logp),
                               rtol=1e-3, atol=1e-4)
    assert out['aatype'].shape == (1, L)
    assert out['dis_embed'].shape == (B, L, L, D_PAIR)
    assert out['dis_embed'].dtype == jnp.bfloat16
    print("KERNEL_OK")
</pallas_src>

<mosaic_0001>
module attributes {stable_mosaic.version = 11 : i64} {
  func.func @kernel(%arg0: i32, %arg1: i32, %arg2: i32, %arg3: memref<1x16x1xf32, #tpu.memory_space<vmem>>, %arg4: memref<1x1x2048xf32, #tpu.memory_space<vmem>>, %arg5: memref<1x16x2048xbf16, #tpu.memory_space<vmem>>) attributes {dimension_semantics = [#tpu.dimension_semantics<parallel>, #tpu.dimension_semantics<parallel>, #tpu.dimension_semantics<parallel>], iteration_bounds = array<i64: 2, 1, 1>, scalar_prefetch = 0 : i64, scratch_operands = 0 : i64, tpu.core_type = #tpu.core_type<tc>, window_params = [{transform_indices = @transform_0, window_bounds = array<i64: 1, 16, 1>}, {transform_indices = @transform_1, window_bounds = array<i64: 1, 1, 2048>}, {transform_indices = @transform_2, window_bounds = array<i64: 1, 16, 2048>}]} {
    %c16_i32 = arith.constant 16 : i32
    %0 = arith.muli %arg1, %c16_i32 : i32
    %1 = tpu.assume_multiple %0, 8 : i32
    %c0 = arith.constant 0 : index
    %2 = arith.index_cast %1 : i32 to index
    %c0_0 = arith.constant 0 : index
    %3 = vector.load %arg3[%c0, %2, %c0_0] : memref<1x16x1xf32, #tpu.memory_space<vmem>>, vector<1x16x1xf32>
    %4 = vector.shape_cast %3 : vector<1x16x1xf32> to vector<16x1xf32>
    %c0_1 = arith.constant 0 : index
    %c0_2 = arith.constant 0 : index
    %c0_3 = arith.constant 0 : index
    %5 = vector.load %arg4[%c0_1, %c0_2, %c0_3] : memref<1x1x2048xf32, #tpu.memory_space<vmem>>, vector<1x1x2048xf32>
    %6 = vector.shape_cast %5 : vector<1x1x2048xf32> to vector<1x2048xf32>
    %7 = vector.broadcast %4 : vector<16x1xf32> to vector<16x2048xf32>
    %8 = vector.broadcast %6 : vector<1x2048xf32> to vector<16x2048xf32>
    %9 = arith.mulf %7, %8 : vector<16x2048xf32>
    %10 = arith.truncf %9 : vector<16x2048xf32> to vector<16x2048xbf16>
    %c0_4 = arith.constant 0 : index
    %c0_5 = arith.constant 0 : index
    %c0_6 = arith.constant 0 : index
    %11 = vector.load %arg5[%c0_4, %c0_5, %c0_6] : memref<1x16x2048xbf16, #tpu.memory_space<vmem>>, vector<1x16x2048xbf16>
    %12 = vector.shape_cast %11 : vector<1x16x2048xbf16> to vector<16x2048xbf16>
    %13 = vector.shape_cast %10 : vector<16x2048xbf16> to vector<1x16x2048xbf16>
    tpu.vector_store %arg5[%c0_4, %c0_5, %c0_6], %13 {strides = array<i32>} : memref<1x16x2048xbf16, #tpu.memory_space<vmem>>, vector<1x16x2048xbf16>,
    return
  }
  func.func @transform_0(%arg0: i32, %arg1: i32, %arg2: i32) -> (i32, i32, i32) {
    %c0_i32 = arith.constant 0 : i32
    %c0_i32_0 = arith.constant 0 : i32
    %c0_i32_1 = arith.constant 0 : i32
    return %arg0, %c0_i32, %c0_i32_0 : i32, i32, i32
  }
  func.func @transform_1(%arg0: i32, %arg1: i32, %arg2: i32) -> (i32, i32, i32) {
    %c0_i32 = arith.constant 0 : i32
    %c0_i32_0 = arith.constant 0 : i32
    return %arg0, %c0_i32, %arg2 : i32, i32, i32
  }
  func.func @transform_2(%arg0: i32, %arg1: i32, %arg2: i32) -> (i32, i32, i32) {
    %c0_i32 = arith.constant 0 : i32
    return %arg0, %arg1, %arg2 : i32, i32, i32
  }
}

</mosaic_0001>

<bundles_post_ra>
// kernel: tpu_custom_call.1
= control target key start
LH: loop header
LB: loop body
LE: loop exit
PB: predicated region body
PF: predicated region fallthrough
CT: control target
= control target key end

     0   :  { %7 = vsyncpa [#allocation3], 0  ;;  %s900_s0 = inlined_call_operand.vmem [shape: f32[2,16,1], index: 0, kind: input, shape index: {}]   ;;  %s901_s1 = inlined_call_operand.vmem [shape: f32[2,1,2048], index: 1, kind: input, shape index: {}]   ;;  %s902_s2 = inlined_call_operand.hbm [shape: bf16[2,16,2048], index: 2, kind: output, shape index: {}]  }
   0x1   :  { %9 = vsyncpa [#allocation3 + $0x1], 0  ;;  %s760_s9 = smov 0   ;;  %s762_s10 = smov 0  }
   0x2   :  { %s764_s11 = smov 0   ;;  %s766_s12 = smov 0  }
   0x3   :  { %s768_s13 = smov 0   ;;  %s770_s14 = smov 0  }
   0x4 LB: > { %s556_s15 = sadd.s32 4294967295, %s739_s14   ;;  %s557_s16 = sadd.s32 4294967294, %s739_s14   ;;  %s739_s14 = sphi %s770_s14, %s15_s14   ;;  %s735_s13 = sphi %s768_s13, %s909_s13   ;;  %s731_s12 = sphi %s766_s12, %s908_s12   ;;  %s727_s11 = sphi %s764_s11, %s907_s11   ;;  %s723_s10 = sphi %s762_s10, %s906_s10   ;;  %s719_s9 = sphi %s760_s9, %s905_s9  }
   0x5   : > { %s34_s17 = sadd.s32 1, %s735_s13  ;;  %s99_s18 = sadd.s32 1, %s727_s11 }
   0x6   : > { %p36_p0 = scmp.ge.s32.totalorder %s34_s17, 2  ;;  %p109_p1 = scmp.ne.s32.totalorder %s727_s11, %s723_s10 }
   0x7   : > { %p110_p2 = scmp.eq.s32.totalorder %s556_s15, 1  ;;  %p115_p3 = scmp.ne.s32.totalorder %s723_s10, %s719_s9 }
   0x8   : > { %s911_s17 = smov (%p36_p0, %s34_s17), 0  ;;  %p116_p5 = scmp.eq.s32.totalorder %s557_s16, 1 }
   0x9   : > { %p800_p4 = por %p110_p2, %p109_p1  ;;  %s92_s20 = ssub.s32 %s735_s13, %s911_s17 }
   0xa   : > { %p560_p6 = scmp.ge.s32.totalorder %s739_s14, 1  ;;  %p97_p7 = scmp.eq.s32.totalorder %s92_s20, 0 }
   0xb   : > { %p807_p8 = por %p116_p5, %p115_p3  ;;  %p154_p9 = scmp.lt.s32.totalorder %s739_s14, 3 }
   0xc   : > { %s813_s22 = scalar_select %p97_p7, %s727_s11, %s99_s18  }
   0xd   : > { %p155_p10 = pnand %p560_p6, %p154_p9 }
   0xe   : > { %p184_p11 = scmp.lt.s32.totalorder (!%p155_p10), %s731_s12, 1  ;;  %s181_s3 = sand.u32 (!%p155_p10), 1, %s723_s10  }
   0xf   : > { %158 = sbr.rel (%p155_p10) target bundleno = 179 (0xb3), region = 28  ;;  %s561_s4 = sshll.u32 (!%p155_p10), %s181_s3, 7 }
  0x10   : > { %s826_s5 = scalar_lea.vmem (!%p155_p10), [#allocation2], %s561_s4  ;;  %s603_s6 = sshll.u32 (!%p155_p10), %s731_s12, 11 }
  0x11   : > { %s461_s7 = sshll.u32 (!%p155_p10), %s826_s5, 4  ;;  %s841_s15 = scalar_lea.hbm (!%p155_p10), %s902_s2, %s603_s6  ;;  %s843_s7 = int_to_ptr.vmem [resolvable:$true] %s461_s7 }
  0x12   : > { %s855_s16 = scalar_lea.sflag (!%p155_p10), [#allocation3], %s181_s3  ;;  %s663_s18 = scalar_lea.vmem (!%p155_p10), %s843_s7, 2048 }
  0x13   : > { %p664_p12 = scmp.ne.s32.totalorder (!%p155_p10), %s843_s7, %s663_s18  ;;  %s742_s20 = smov (!%p155_p10), [#allocation2]  }
  0x14   : > { %v741_v0 = vmov 0   ;;  %s185_s23 = scalar_select %p184_p11, %s731_s12, 1  ;;  %v218_v3 = vlaneseq }
  0x15   : > { %662 = vset.pattern.permute.xlu0 %v741_v0  ;;  %p665_p13 = pnand %p664_p12, %p800_p4 }
  0x16   : > { %s586_s24 = sshll.u32 %s185_s23, 4  ;;  %v219_v4 = vshrl.u32 %v218_v3, 7  ;;  %s667_s23 = sshll.u32 %s742_s20, 4  ;;  %s668_s23 = int_to_ptr.vmem [resolvable:$false] %s667_s23 }
  0x17   : > { %s188_s27 = scalar_lea.vmem %s900_s0, %s586_s24  ;;  %s196_s30 = scalar_lea.vmem %s901_s1, %s586_s24 }
  0x18   : > { %v202_v1 = vld [vmem:[%s188_s27] sm:$0xff]  ;;  %v203_v2 = vld [vmem:[%s188_s27 + $0x8] sm:$0xff]  ;;  %v220_v5 = vsub.s32 0, %v219_v4  ;;  %v224_v6 = vsub.s32 1, %v219_v4  ;;  %v228_v7 = vsub.s32 2, %v219_v4  ;;  %v232_v8 = vsub.s32 3, %v219_v4  ;;  %p666_p0 = pneg %p665_p13  ;;  %p670_p1 = scmp.lt.s32.totalorder %s843_s7, %s668_s23 }
  0x19   : > { %208 = vperm.xlu0 %662, %v202_v1   ;;  %v204_v9 = vld [vmem:[%s196_s30] sm:$0xff]  ;;  %v236_v10 = vsub.s32 4, %v219_v4  ;;  %v240_v11 = vsub.s32 5, %v219_v4  ;;  %v244_v12 = vsub.s32 6, %v219_v4  ;;  %v248_v13 = vsub.s32 7, %v219_v4  ;;  %v205_v14 = vld [vmem:[%s196_s30 + $0x8] sm:$0xff] }
  0x1a   : > { %v221_v15 = vrot.slane %v204_v9, %v220_v5  ;;  %v225_v16 = vrot.slane %v204_v9, %v224_v6  ;;  %v229_v17 = vrot.slane %v204_v9, %v228_v7  ;;  %v233_v18 = vrot.slane %v204_v9, %v232_v8  ;;  %s669_s24 = scalar_lea.vmem %s668_s23, 4096 }
  0x1b   : > { %v237_v19 = vrot.slane %v204_v9, %v236_v10  ;;  %v241_v20 = vrot.slane %v204_v9, %v240_v11  ;;  %v245_v21 = vrot.slane %v204_v9, %v244_v12  ;;  %v249_v22 = vrot.slane %v204_v9, %v248_v13  ;;  %p671_p2 = scmp.lt.s32.totalorder %s669_s24, %s663_s18 }
  0x1c   : > { %v253_v23 = vrot.slane %v205_v14, %v220_v5  ;;  %v257_v24 = vrot.slane %v205_v14, %v224_v6  ;;  %v261_v25 = vrot.slane %v205_v14, %v228_v7  ;;  %v265_v26 = vrot.slane %v205_v14, %v232_v8 }
  0x1d   : > { %213 = vperm.xlu0 %662, %v203_v2   ;;  %v269_v27 = vrot.slane %v205_v14, %v236_v10  ;;  %v273_v28 = vrot.slane %v205_v14, %v240_v11  ;;  %v277_v29 = vrot.slane %v205_v14, %v244_v12  ;;  %v281_v30 = vrot.slane %v205_v14, %v248_v13  ;;  %p672_p3 = por %p671_p2, %p670_p1 }
  0x1f   : > { %p673_p5 = pnand %p672_p3, %p666_p0 }
  0x94   : > { %v209_v31 = vpop.permute.xlu0 %208 }
  0x95   : > { %v298_v32 = vmul.f32 %v221_v15, %v209_v31  ;;  %v299_v33 = vmul.f32 %v225_v16, %v209_v31  ;;  %v300_v34 = vmul.f32 %v229_v17, %v209_v31  ;;  %v301_v35 = vmul.f32 %v233_v18, %v209_v31 }
  0x96   : > { %v302_v36 = vmul.f32 %v237_v19, %v209_v31  ;;  %v303_v37 = vmul.f32 %v241_v20, %v209_v31  ;;  %v304_v38 = vmul.f32 %v245_v21, %v209_v31  ;;  %v305_v39 = vmul.f32 %v249_v22, %v209_v31 }
  0x97   : > { %v306_v40 = vmul.f32 %v253_v23, %v209_v31  ;;  %v307_v41 = vmul.f32 %v257_v24, %v209_v31  ;;  %v308_v42 = vmul.f32 %v261_v25, %v209_v31  ;;  %v309_v43 = vmul.f32 %v265_v26, %v209_v31 }
  0x98   : > { %v310_v44 = vmul.f32 %v269_v27, %v209_v31  ;;  %v311_v45 = vmul.f32 %v273_v28, %v209_v31  ;;  %v312_v46 = vmul.f32 %v277_v29, %v209_v31  ;;  %v313_v47 = vmul.f32 %v281_v30, %v209_v31  ;;  %v214_v48 = vpop.permute.xlu0 %213 }
  0x99   : > { %v587_v49 = vpack.c.bf16 %v299_v33, %v298_v32  ;;  %v588_v50 = vpack.c.bf16 %v301_v35, %v300_v34  ;;  %v589_v51 = vpack.c.bf16 %v303_v37, %v302_v36  ;;  %v590_v52 = vpack.c.bf16 %v305_v39, %v304_v38 }
  0x9a   : > { %v591_v53 = vpack.c.bf16 %v307_v41, %v306_v40  ;;  %v592_v54 = vpack.c.bf16 %v309_v43, %v308_v42  ;;  %v593_v55 = vpack.c.bf16 %v311_v45, %v310_v44  ;;  %v594_v56 = vpack.c.bf16 %v313_v47, %v312_v46 }
  0x9b   : > { %426 = vst [vmem:[%s826_s5] sm:$0xff] %v587_v49  ;;  %427 = vst [vmem:[%s826_s5 + $0x8] sm:$0xff] %v588_v50  ;;  %v314_v57 = vmul.f32 %v221_v15, %v214_v48  ;;  %v315_v58 = vmul.f32 %v225_v16, %v214_v48  ;;  %v316_v59 = vmul.f32 %v229_v17, %v214_v48 }
  0x9c   : > { %428 = vst [vmem:[%s826_s5 + $0x10] sm:$0xff] %v589_v51  ;;  %429 = vst [vmem:[%s826_s5 + $0x18] sm:$0xff] %v590_v52  ;;  %v317_v60 = vmul.f32 %v233_v18, %v214_v48  ;;  %v318_v61 = vmul.f32 %v237_v19, %v214_v48  ;;  %v319_v62 = vmul.f32 %v241_v20, %v214_v48 }
  0x9d   : > { %430 = vst [vmem:[%s826_s5 + $0x20] sm:$0xff] %v591_v53  ;;  %431 = vst [vmem:[%s826_s5 + $0x28] sm:$0xff] %v592_v54  ;;  %v320_v63 = vmul.f32 %v245_v21, %v214_v48  ;;  %v321_v0 = vmul.f32 %v249_v22, %v214_v48  ;;  %v322_v1 = vmul.f32 %v253_v23, %v214_v48 }
  0x9e   : > { %432 = vst [vmem:[%s826_s5 + $0x30] sm:$0xff] %v593_v55  ;;  %433 = vst [vmem:[%s826_s5 + $0x38] sm:$0xff] %v594_v56  ;;  %v323_v2 = vmul.f32 %v257_v24, %v214_v48  ;;  %v324_v3 = vmul.f32 %v261_v25, %v214_v48  ;;  %v325_v4 = vmul.f32 %v265_v26, %v214_v48 }
  0x9f   : > { %v326_v5 = vmul.f32 %v269_v27, %v214_v48  ;;  %v327_v6 = vmul.f32 %v273_v28, %v214_v48  ;;  %v328_v7 = vmul.f32 %v277_v29, %v214_v48  ;;  %v329_v8 = vmul.f32 %v281_v30, %v214_v48 }
  0xa0   : > { %v595_v9 = vpack.c.bf16 %v315_v58, %v314_v57  ;;  %v596_v10 = vpack.c.bf16 %v317_v60, %v316_v59  ;;  %v597_v11 = vpack.c.bf16 %v319_v62, %v318_v61  ;;  %v598_v12 = vpack.c.bf16 %v321_v0, %v320_v63 }
  0xa1   : > { %v599_v13 = vpack.c.bf16 %v323_v2, %v322_v1  ;;  %v600_v14 = vpack.c.bf16 %v325_v4, %v324_v3  ;;  %v601_v15 = vpack.c.bf16 %v327_v6, %v326_v5  ;;  %v602_v16 = vpack.c.bf16 %v329_v8, %v328_v7 }
  0xa2   : > { %434 = vst [vmem:[%s826_s5 + $0x40] sm:$0xff] %v595_v9  ;;  %435 = vst [vmem:[%s826_s5 + $0x48] sm:$0xff] %v596_v10 }
  0xa3   : > { %436 = vst [vmem:[%s826_s5 + $0x50] sm:$0xff] %v597_v11  ;;  %437 = vst [vmem:[%s826_s5 + $0x58] sm:$0xff] %v598_v12 }
  0xa4   : > { %438 = vst [vmem:[%s826_s5 + $0x60] sm:$0xff] %v599_v13  ;;  %439 = vst [vmem:[%s826_s5 + $0x68] sm:$0xff] %v600_v14 }
  0xa5   : > { %440 = vst [vmem:[%s826_s5 + $0x70] sm:$0xff] %v601_v15  ;;  %441 = vst [vmem:[%s826_s5 + $0x78] sm:$0xff] %v602_v16 }
  0xa6   : > { %676 = shalt.err (!%p673_p5)
}
  0xa7   : > { %s677_s25 = scalar_lea.hbm %s841_s15, 2048  ;;  %s681_s28 = scalar_lea.hbm %s902_s2, 4096 }
  0xa8   : > { %p678_p6 = scmp.ne.s32.totalorder %s841_s15, %s677_s25  ;;  %p682_p10 = scmp.lt.s32.totalorder %s841_s15, %s902_s2 }
  0xa9   : > { %p683_p11 = scmp.lt.s32.totalorder %s681_s28, %s677_s25 }
  0xaa   : > { %p679_p7 = pnand %p678_p6, %p800_p4 }
  0xab   : > { %p684_p12 = por %p683_p11, %p682_p10 }
  0xac   : > { %p680_p9 = pneg %p679_p7 }
  0xae   : > { %p685_p13 = pnand %p684_p12, %p680_p9 }
  0xb0   : > { %688 = shalt.err (!%p685_p13)
}
  0xb1   : > { %s743_s3 = smov 1024   ;;  %s744_s4 = smov 64  }
  0xb2   : > { %604 = dma.vmem_to_hbm [thread:$0]  (%p800_p4), %s843_s7, 2048, %s841_s15, %s855_s16, %s743_s3, %s743_s3, %s744_s4  }
  0xb3 PF: > { %p610_p0 = scmp.ge.s32.totalorder %s739_s14, 2  ;;  %s476_s5 = sand.u32 1, %s719_s9  }
  0xb4   : > { %s477_s6 = scalar_lea.sflag [#allocation3], %s476_s5 }
  0xb5   : > { %p607_p1 = pnand %p610_p0, %p807_p8 }
  0xb7   : > { %p608_p2 = pneg %p607_p1 }
  0xb9   : > { %714 = dma.done.wait (%p608_p2), %s477_s6, 2048  }
  0xba   : > { %716 = vsyncadd (%p608_p2), %s477_s6, 4294965248  ;;  %s15_s14 = sadd.s32 1, %s739_s14   ;;  %s905_s9 = smov %s723_s10 }
  0xbb   : > { %p12_p3 = scmp.ge.s32.totalorder %s15_s14, 4   ;;  %s906_s10 = smov %s727_s11 }
  0xbc   : > { %s907_s11 = smov %s813_s22  ;;  %s908_s12 = smov %s735_s13 }
  0xbd   : > { %s909_s13 = smov %s911_s17  ;;  %14 = sbr.rel (!%p12_p3) target bundleno = 4 (0x4), region = 67 }
  0xc2   :  { %482 = vsyncpa [#allocation3], 1 }
  0xc3   :  { %484 = vsyncpa [#allocation3 + $0x1], 1 }

</bundles_post_ra>
